<compile_context>
chip_gen: v6e
topology: v6e:2x2x1
jax: 0.10.0
libtpu: 0.0.40
codegen_flags: <defaults>
</compile_context>

<pallas_src>
import jax
import jax.numpy as jnp
from jax.experimental import pallas as pl
from jax.experimental.pallas import tpu as pltpu


# ---- static layout of the packed parameter blob -----------------------------
IN_FEATURES = 11          # linear1 fan-in (flattened features per example)
HIDDEN = 5                # linear1 fan-out
LANES = 128               # TPU lane width; all blob rows / outputs padded to this
B1_ROW = 0                # bias1 lives in row 0, lanes [0:HIDDEN]
B2_ROW = 1                # bias2 lives in row 1, lanes [0:latent]
W1_ROW = 8                # W1 occupies rows [8:19]  (sublane-aligned start)
W2_ROW = 24               # W2 occupies rows [24:152] (only first HIDDEN rows nonzero)
BLOB_ROWS = W2_ROW + LANES  # 152 rows x 128 lanes x 4 B ~= 76 KiB, one DMA


def ae_encoder_kernel(x_ref, blob_ref, y_ref):
    x = x_ref[...]                                    # (B, 11)

    b1 = blob_ref[B1_ROW:B1_ROW + 1, :]               # (1, 128), zero-padded
    b2 = blob_ref[B2_ROW:B2_ROW + 1, :]               # (1, 128), zero-padded
    w1 = blob_ref[W1_ROW:W1_ROW + IN_FEATURES, :]     # (11, 128), zero-padded
    w2 = blob_ref[W2_ROW:W2_ROW + LANES, :]           # (128, 128), zero-padded

    # linear1 + ReLU  (padded lanes stay exactly 0: relu(0 + 0) = 0)
    h = jnp.maximum(
        jnp.dot(x, w1, preferred_element_type=jnp.float32) + b1, 0.0)

    # linear2 (padded rows of w2 are 0, so padded lanes of h contribute nothing)
    y_ref[...] = jnp.dot(h, w2, preferred_element_type=jnp.float32) + b2


def pack_params(w1, b1, w2, b2):
    """Pack (11,5) W1, (5,) b1, (5,latent) W2, (latent,) b2 into one padded blob."""
    latent = w2.shape[1]
    blob = jnp.zeros((BLOB_ROWS, LANES), dtype=jnp.float32)
    blob = blob.at[B1_ROW, :HIDDEN].set(b1)
    blob = blob.at[B2_ROW, :latent].set(b2)
    blob = blob.at[W1_ROW:W1_ROW + IN_FEATURES, :HIDDEN].set(w1)
    blob = blob.at[W2_ROW:W2_ROW + HIDDEN, :latent].set(w2)
    return blob


def ae_encoder_forward(x, blob, latent_dims):
    """x: (B, ...) flattening to (B, 11). Returns (B, latent_dims) float32."""
    B = x.shape[0]
    x2 = x.reshape(B, -1).astype(jnp.float32)   # torch.flatten(x, start_dim=1)
    assert x2.shape[1] == IN_FEATURES

    vmem = pl.BlockSpec(memory_space=pltpu.MemorySpace.VMEM)
    y_pad = pl.pallas_call(
        ae_encoder_kernel,
        out_shape=jax.ShapeDtypeStruct((B, LANES), jnp.float32),
        in_specs=[vmem, vmem],
        out_specs=vmem,
    )(x2, blob)
    return y_pad[:, :latent_dims]


def reference_forward(x, w1, b1, w2, b2):
    """Pure-JAX reference of the PyTorch AEEncoder forward."""
    xf = x.reshape(x.shape[0], -1)
    h = jnp.maximum(xf @ w1 + b1, 0.0)
    return h @ w2 + b2


if __name__ == "__main__":
    key = jax.random.PRNGKey(0)
    k_x, k_w1, k_b1, k_w2, k_b2 = jax.random.split(key, 5)

    batch = 8
    latent_dims = 2

    # Module flattens to 11 features per example; feed it already flat.
    x = jax.random.normal(k_x, (batch, IN_FEATURES), dtype=jnp.float32)

    # PyTorch nn.Linear-style uniform(-1/sqrt(fan_in), 1/sqrt(fan_in)) init,
    # stored as (in_features, out_features) so each layer is x @ W + b.
    bound1 = 1.0 / (IN_FEATURES ** 0.5)
    w1 = jax.random.uniform(k_w1, (IN_FEATURES, HIDDEN),
                            minval=-bound1, maxval=bound1, dtype=jnp.float32)
    b1 = jax.random.uniform(k_b1, (HIDDEN,),
                            minval=-bound1, maxval=bound1, dtype=jnp.float32)
    bound2 = 1.0 / (HIDDEN ** 0.5)
    w2 = jax.random.uniform(k_w2, (HIDDEN, latent_dims),
                            minval=-bound2, maxval=bound2, dtype=jnp.float32)
    b2 = jax.random.uniform(k_b2, (latent_dims,),
                            minval=-bound2, maxval=bound2, dtype=jnp.float32)

    blob = pack_params(w1, b1, w2, b2)

    y = ae_encoder_forward(x, blob, latent_dims)
    jax.block_until_ready(y)

    # Numerical sanity check against the pure-JAX reference.
    y_ref = reference_forward(x, w1, b1, w2, b2)
    assert y.shape == (batch, latent_dims)
    assert jnp.allclose(y, y_ref, atol=1e-5, rtol=1e-5)

    print("KERNEL_OK")
</pallas_src>

<mosaic_0001>
module attributes {stable_mosaic.version = 11 : i64} {
  func.func @ae_encoder_kernel(%arg0: memref<8x11xf32, #tpu.memory_space<vmem>>, %arg1: memref<152x128xf32, #tpu.memory_space<vmem>>, %arg2: memref<8x128xf32, #tpu.memory_space<vmem>>) attributes {dimension_semantics = [], scalar_prefetch = 0 : i64, scratch_operands = 0 : i64, tpu.core_type = #tpu.core_type<tc>} {
    %c0 = arith.constant 0 : index
    %c0_0 = arith.constant 0 : index
    %0 = vector.load %arg0[%c0, %c0_0] : memref<8x11xf32, #tpu.memory_space<vmem>>, vector<8x11xf32>
    %c0_1 = arith.constant 0 : index
    %c0_2 = arith.constant 0 : index
    %1 = vector.load %arg1[%c0_1, %c0_2] : memref<152x128xf32, #tpu.memory_space<vmem>>, vector<1x128xf32>
    %c1 = arith.constant 1 : index
    %c0_3 = arith.constant 0 : index
    %2 = vector.load %arg1[%c1, %c0_3] : memref<152x128xf32, #tpu.memory_space<vmem>>, vector<1x128xf32>
    %c8 = arith.constant 8 : index
    %c0_4 = arith.constant 0 : index
    %3 = vector.load %arg1[%c8, %c0_4] : memref<152x128xf32, #tpu.memory_space<vmem>>, vector<11x128xf32>
    %c24 = arith.constant 24 : index
    %c0_5 = arith.constant 0 : index
    %4 = vector.load %arg1[%c24, %c0_5] : memref<152x128xf32, #tpu.memory_space<vmem>>, vector<128x128xf32>
    %cst = arith.constant dense<0.000000e+00> : vector<8x128xf32>
    %5 = tpu.matmul %0, %3, %cst {dimension_numbers = #tpu.dot_dimension_numbers<[1], [0], [0], [1], [0, 0, 1, 1], [], []>} : vector<8x11xf32>, vector<11x128xf32>, vector<8x128xf32> -> vector<8x128xf32>
    %6 = vector.broadcast %1 : vector<1x128xf32> to vector<8x128xf32>
    %7 = arith.addf %5, %6 : vector<8x128xf32>
    %cst_6 = arith.constant 0.000000e+00 : f32
    %8 = vector.broadcast %cst_6 : f32 to vector<8x128xf32>
    %9 = arith.maximumf %7, %8 : vector<8x128xf32>
    %cst_7 = arith.constant dense<0.000000e+00> : vector<8x128xf32>
    %10 = tpu.matmul %9, %4, %cst_7 {dimension_numbers = #tpu.dot_dimension_numbers<[1], [0], [0], [1], [0, 0, 1, 1], [], []>} : vector<8x128xf32>, vector<128x128xf32>, vector<8x128xf32> -> vector<8x128xf32>
    %11 = vector.broadcast %2 : vector<1x128xf32> to vector<8x128xf32>
    %12 = arith.addf %10, %11 : vector<8x128xf32>
    %c0_8 = arith.constant 0 : index
    %c0_9 = arith.constant 0 : index
    %13 = vector.load %arg2[%c0_8, %c0_9] : memref<8x128xf32, #tpu.memory_space<vmem>>, vector<8x128xf32>
    tpu.vector_store %arg2[%c0_8, %c0_9], %12 {strides = array<i32>} : memref<8x128xf32, #tpu.memory_space<vmem>>, vector<8x128xf32>,
    return
  }
}

</mosaic_0001>

<bundles_post_ra>
// kernel: tpu_custom_call.1
= control target key start
LH: loop header
LB: loop body
LE: loop exit
PB: predicated region body
PF: predicated region fallthrough
CT: control target
= control target key end

     0   :  { %7 = vsyncpa [#allocation3], 0  ;;  %s403_s0 = inlined_call_operand.hbm [shape: f32[8,11], index: 0, kind: input, shape index: {}]   ;;  %s404_s1 = inlined_call_operand.hbm [shape: f32[152,128], index: 1, kind: input, shape index: {}]   ;;  %s405_s2 = inlined_call_operand.hbm [shape: f32[8,128], index: 2, kind: output, shape index: {}]  }
   0x1   :  { %8 = vsyncpa [#allocation6], 0 }
   0x2   :  { %9 = vsyncpa [#allocation4], 0  ;;  %s372_s9 = smov [#allocation2]   ;;  %s373_s11 = smov [#allocation5]  }
   0x3   :  { %s16_s10 = sshll.u32 %s372_s9, 4  ;;  %s25_s12 = sshll.u32 %s373_s11, 4  ;;  %s17_s10 = int_to_ptr.vmem [resolvable:$true] %s16_s10  ;;  %s26_s12 = int_to_ptr.vmem [resolvable:$true] %s25_s12 }
   0x4   :  { %s314_s13 = scalar_lea.vmem %s17_s10, 128  ;;  %p319_p1 = scmp.lt.s32.totalorder %s17_s10, %s17_s10 }
   0x5   :  { %p315_p0 = scmp.ne.s32.totalorder %s17_s10, %s314_s13  ;;  %p320_p2 = scmp.lt.s32.totalorder %s314_s13, %s314_s13 }
   0x7   :  { %p321_p3 = por %p320_p2, %p319_p1 }
   0x9   :  { %p322_p4 = pnand %p321_p3, %p315_p0 }
   0xb   :  { %325 = shalt.err (!%p322_p4)
}
   0xc   :  { %19 = dma.hbm_to_vmem [thread:$0]  %s403_s0, 128, %s17_s10, [#allocation3]  }
   0xd   :  { %s334_s16 = scalar_lea.vmem %s26_s12, 2432  ;;  %p339_p6 = scmp.lt.s32.totalorder %s26_s12, %s26_s12 }
   0xe   :  { %p335_p5 = scmp.ne.s32.totalorder %s26_s12, %s334_s16  ;;  %p340_p7 = scmp.lt.s32.totalorder %s334_s16, %s334_s16 }
  0x10   :  { %p341_p8 = por %p340_p7, %p339_p6 }
  0x12   :  { %p342_p9 = pnand %p341_p8, %p335_p5 }
  0x14   :  { %345 = shalt.err (!%p342_p9)
}
  0x15   :  { %s374_s17 = smov 128   ;;  %s375_s18 = smov 8  }
  0x16   :  { %31 = dma.hbm_to_vmem [thread:$0]  %s404_s1, 2432, %s26_s12, [#allocation6], %s374_s17, %s374_s17, %s375_s18  }
  0x17   :  { %366 = dma.done.wait [#allocation3], 128  }
  0x18   :  { %367 = vsyncadd [#allocation3], 4294967168 }
  0x19   :  { %368 = dma.done.wait [#allocation6], 2432  }
  0x1a   :  { %369 = vsyncadd [#allocation6], 4294964864  ;;  %v376_v0 = vmov 0.0   ;;  %vm377_vm0 = vmmov 0   ;;  %vm67_vm1 = vcmask 1042432   ;;  %v41_v2 = vld [vmem:[#allocation5 + $0x8] sm:$0xff] }
  0x1b   :  { %257 = vmatprep.subr.mxu0 %v376_v0  ;;  %261 = vmatprep.mubr.msk.f32.mxu0 %vm377_vm0, %v376_v0  ;;  %v42_v1 = vld [vmem:[#allocation5 + $0x10] sm:$0x7]  ;;  %v38_v3 = vld [vmem:[#allocation2] sm:$0xff]  ;;  %vm63_vm2 = vcmask 89088   ;;  %v57_v5 = vld [vmem:[#allocation5 + $0x88] sm:$0xff]  ;;  %s378_s0 = smov [#allocation7]  }
  0x1c   :  { %264 = vmatprep.subr.mxu1 %v376_v0  ;;  %296 = vmatprep.mubr.msk.f32.mxu1 %vm377_vm0, %v376_v0  ;;  %v58_v4 = vld [vmem:[#allocation5 + $0x90] sm:$0xff]  ;;  %v56_v6 = vld [vmem:[#allocation5 + $0x80] sm:$0xff]  ;;  %v55_v7 = vld [vmem:[#allocation5 + $0x78] sm:$0xff]  ;;  %s223_s1 = sshll.u32 %s378_s0, 4  ;;  %s224_s1 = int_to_ptr.vmem [resolvable:$true] %s223_s1 }
  0x1d   :  { %258 = vmatpush3.msk.msra.mxu0 %vm67_vm1, %v42_v1  ;;  %265 = vmatpush3.msra.mxu1 %v58_v4  ;;  %v54_v8 = vld [vmem:[#allocation5 + $0x70] sm:$0xff]  ;;  %v53_v9 = vld [vmem:[#allocation5 + $0x68] sm:$0xff]  ;;  %v52_v10 = vld [vmem:[#allocation5 + $0x60] sm:$0xff]  ;;  %s346_s21 = scalar_lea.vmem %s224_s1, 128  ;;  %p351_p11 = scmp.lt.s32.totalorder %s224_s1, %s224_s1 }
  0x1e   :  { %259 = vmatprep.subr.mxu0 %v376_v0  ;;  %266 = vmatprep.subr.mxu1 %v376_v0  ;;  %v51_v11 = vld [vmem:[#allocation5 + $0x58] sm:$0xff]  ;;  %v50_v12 = vld [vmem:[#allocation5 + $0x50] sm:$0xff]  ;;  %v49_v13 = vld [vmem:[#allocation5 + $0x48] sm:$0xff]  ;;  %p347_p10 = scmp.ne.s32.totalorder %s224_s1, %s346_s21  ;;  %p352_p12 = scmp.lt.s32.totalorder %s346_s21, %s346_s21 }
  0x1f   :  { %260 = vmatpush3.msra.mxu0 %v41_v2  ;;  %267 = vmatpush3.msra.mxu1 %v57_v5  ;;  %v48_v14 = vld [vmem:[#allocation5 + $0x40] sm:$0xff]  ;;  %v47_v15 = vld [vmem:[#allocation5 + $0x38] sm:$0xff]  ;;  %v46_v16 = vld [vmem:[#allocation5 + $0x30] sm:$0xff] }
  0x20   :  { %262 = vmatmul.mubr.msk.f32.vlgmr.msra.gmra.mxu0 %vm63_vm2, %v38_v3  ;;  %268 = vmatprep.subr.mxu1 %v376_v0  ;;  %v45_v17 = vld [vmem:[#allocation5 + $0x28] sm:$0xff]  ;;  %v44_v18 = vld [vmem:[#allocation5 + $0x20] sm:$0xff]  ;;  %v43_v19 = vld [vmem:[#allocation5 + $0x18] sm:$0xff]  ;;  %p353_p13 = por %p352_p12, %p351_p11 }
  0x21   :  { %269 = vmatpush3.msra.mxu1 %v56_v6  ;;  %v233_v20 = vld [vmem:[#allocation5] ss:$0 sm:$0xff]  ;;  %v236_v25 = vld [vmem:[#allocation5 + $0x1] ss:$0 sm:$0xff] }
  0x22   :  { %270 = vmatprep.subr.mxu1 %v376_v0  ;;  %p354_p0 = pnand %p353_p13, %p347_p10 }
  0x23   :  { %271 = vmatpush3.msra.mxu1 %v55_v7 }
  0x24   :  { %272 = vmatprep.subr.mxu1 %v376_v0 }
  0x25   :  { %273 = vmatpush3.msra.mxu1 %v54_v8 }
  0x26   :  { %274 = vmatprep.subr.mxu1 %v376_v0 }
  0x27   :  { %275 = vmatpush3.msra.mxu1 %v53_v9 }
  0x28   :  { %276 = vmatprep.subr.mxu1 %v376_v0 }
  0x29   :  { %277 = vmatpush3.msra.mxu1 %v52_v10 }
  0x2a   :  { %278 = vmatprep.subr.mxu1 %v376_v0 }
  0x2b   :  { %279 = vmatpush3.msra.mxu1 %v51_v11 }
  0x2c   :  { %280 = vmatprep.subr.mxu1 %v376_v0 }
  0x2d   :  { %281 = vmatpush3.msra.mxu1 %v50_v12 }
  0x2e   :  { %282 = vmatprep.subr.mxu1 %v376_v0 }
  0x2f   :  { %283 = vmatpush3.msra.mxu1 %v49_v13 }
  0x30   :  { %284 = vmatprep.subr.mxu1 %v376_v0 }
  0x31   :  { %285 = vmatpush3.msra.mxu1 %v48_v14 }
  0x32   :  { %286 = vmatprep.subr.mxu1 %v376_v0 }
  0x33   :  { %287 = vmatpush3.msra.mxu1 %v47_v15 }
  0x34   :  { %288 = vmatprep.subr.mxu1 %v376_v0 }
  0x35   :  { %289 = vmatpush3.msra.mxu1 %v46_v16 }
  0x36   :  { %290 = vmatprep.subr.mxu1 %v376_v0 }
  0x37   :  { %291 = vmatpush3.msra.mxu1 %v45_v17 }
  0x38   :  { %292 = vmatprep.subr.mxu1 %v376_v0 }
  0x39   :  { %293 = vmatpush3.msra.mxu1 %v44_v18 }
  0x3a   :  { %294 = vmatprep.subr.mxu1 %v376_v0 }
  0x3b   :  { %295 = vmatpush3.msra.mxu1 %v43_v19 }
  0xe0   :  { %v137_v21 = vpop.f32.mrf.mxu0 }
  0xe1   :  { %v138_v22 = vadd.f32 %v233_v20, %v137_v21 }
  0xe2   :  { %v263_v23 = vpop.f32.mrf.mxu0 }
  0xe3   :  { %v141_v24 = vmax.f32 %v138_v22, 0.0 }
  0xe5   :  { %297 = vmatmul.mubr.f32.vlgmr.msra.gmra.mxu1 %v141_v24 }
 0x1a5   :  { %v212_v26 = vpop.f32.mrf.mxu1 }
 0x1a6   :  { %v213_v27 = vadd.f32 %v236_v25, %v212_v26 }
 0x1a7   :  { %v298_v28 = vpop.f32.mrf.mxu1 }
 0x1a8   :  { %216 = vst [vmem:[#allocation7] sm:$0xff] %v213_v27 }
 0x1a9   :  { %357 = shalt.err (!%p354_p0)
}
 0x1aa   :  { %226 = dma.vmem_to_hbm [thread:$0]  %s224_s1, 128, %s405_s2, [#allocation4]  }
 0x1ab   :  { %370 = dma.done.wait [#allocation4], 128  }
 0x1ac   :  { %371 = vsyncadd [#allocation4], 4294967168 }
 0x1ad   :  { %230 = vsyncpa [#allocation3], 1 }
 0x1ae   :  { %231 = vsyncpa [#allocation6], 1 }
 0x1af   :  { %232 = vsyncpa [#allocation4], 1 }

</bundles_post_ra>
